<compile_context>
chip_gen: v6e
topology: v6e:2x2x1
jax: 0.10.0
libtpu: 0.0.40
codegen_flags: <defaults>
</compile_context>

<pallas_src>
import jax
import jax.numpy as jnp
from jax.experimental import pallas as pl
from jax.experimental.pallas import tpu as pltpu

_LANE = 128   # lane width (last dim quantum)
_SUB = 8      # sublane width (second-to-last dim quantum)


def _round_up(x, m):
    return (x + m - 1) // m * m


def _qnet_kernel(x_ref, w1_ref, b1_ref, w2_ref, b2_ref, o_ref):
    # x:  (TB, In)       w1: (In, H_p)     b1: (1, H_p)
    # w2: (H_p, Out)     b2: (1, Out)      o:  (TB, Out)
    # In / Out are the true (unpadded) feature dims; H_p is hidden padded to
    # 128 lanes so the intermediate h is lane-dense. Mosaic pads the small
    # K=In MXU operand internally in VMEM.
    x = x_ref[...].astype(jnp.float32)  # mirrors the .float() cast in forward()

    # linear1 + ReLU (fused: MXU matmul + VPU elementwise)
    h = jnp.dot(x, w1_ref[...], preferred_element_type=jnp.float32) + b1_ref[...]
    h = jnp.maximum(h, 0.0)

    # linear2
    y = jnp.dot(h, w2_ref[...], preferred_element_type=jnp.float32) + b2_ref[...]
    o_ref[...] = y.astype(o_ref.dtype)


@jax.jit
def linear_qnet_forward(x, w1, b1, w2, b2):
    """Forward pass.

    x:  (B, input_size) in any dtype (cast to f32 in-kernel, like .float()).
    w1: (input_size, hidden_p)  b1: (1, hidden_p)     [hidden pre-padded]
    w2: (hidden_p, output_size) b2: (1, output_size)
    Returns (B, output_size) float32.
    """
    B, in_size = x.shape
    in_w, hid_p = w1.shape
    assert in_w == in_size, "w1 first dim must match input_size"
    out_size = w2.shape[1]

    # Row tile: multiple of 8 sublanes, capped at 128. Small cap keeps batch
    # padding waste < TB rows and gives multiple grid steps for v7x 2-TC
    # sharding; per-step overhead (~0.35us) is negligible.
    TB = min(128, _round_up(B, _SUB))
    B_p = _round_up(B, TB)

    # Only the batch axis is padded (rows sliced off below); feature dims stay
    # at their true widths in HBM.
    if B_p != B:
        x = jnp.pad(x, ((0, B_p - B), (0, 0)))

    grid = (B_p // TB,)

    itemsize = jnp.dtype(x.dtype).itemsize
    flops = 2 * B_p * (in_size * hid_p + hid_p * out_size)
    bytes_accessed = (
        B_p * in_size * itemsize          # x stream
        + (w1.size + b1.size + w2.size + b2.size) * 4  # resident params (f32)
        + B_p * out_size * 4              # output writeback
    )

    out = pl.pallas_call(
        _qnet_kernel,
        out_shape=jax.ShapeDtypeStruct((B_p, out_size), jnp.float32),
        grid=grid,
        in_specs=[
            pl.BlockSpec((TB, in_size), lambda i: (i, 0)),    # x: row-tiled, true lane width
            pl.BlockSpec((in_size, hid_p), lambda i: (0, 0)),  # w1: VMEM-resident
            pl.BlockSpec((1, hid_p), lambda i: (0, 0)),        # b1: VMEM-resident
            pl.BlockSpec((hid_p, out_size), lambda i: (0, 0)),  # w2: VMEM-resident
            pl.BlockSpec((1, out_size), lambda i: (0, 0)),      # b2: VMEM-resident
        ],
        out_specs=pl.BlockSpec((TB, out_size), lambda i: (i, 0)),  # unpadded output
        compiler_params=pltpu.CompilerParams(
            dimension_semantics=("parallel",),  # shard batch tiles across TCs (v7x)
        ),
        cost_estimate=pl.CostEstimate(
            flops=flops, transcendentals=0, bytes_accessed=bytes_accessed),
    )(x, w1, b1, w2, b2)

    # Strip batch-row padding only (feature dims were never padded).
    return out[:B] if B_p != B else out


def init_params(key, input_size, hidden_size, output_size):
    """Deterministic init matching nn.Linear's U(-1/sqrt(fan_in), 1/sqrt(fan_in)).

    Weights are returned already transposed to (in_features, out_features) so
    the kernel does x @ W directly (PyTorch stores (out, in) and does x @ W.T).
    """
    k1, k2, k3, k4 = jax.random.split(key, 4)
    bound1 = 1.0 / jnp.sqrt(jnp.float32(input_size))
    bound2 = 1.0 / jnp.sqrt(jnp.float32(hidden_size))
    w1 = jax.random.uniform(k1, (input_size, hidden_size), jnp.float32, -bound1, bound1)
    b1 = jax.random.uniform(k2, (1, hidden_size), jnp.float32, -bound1, bound1)
    w2 = jax.random.uniform(k3, (hidden_size, output_size), jnp.float32, -bound2, bound2)
    b2 = jax.random.uniform(k4, (1, output_size), jnp.float32, -bound2, bound2)
    return w1, b1, w2, b2


def prepare_params(w1, b1, w2, b2):
    """One-time prep: pad the hidden dim to 128 lanes (zero padding is inert
    through ReLU and the second matmul). Done ONCE outside the jitted forward
    so no pad HLOs run per call. Input/output feature dims are NOT padded."""
    hidden = w1.shape[1]
    hid_p = _round_up(hidden, _LANE)
    pad_h = hid_p - hidden
    w1_p = jnp.pad(w1.astype(jnp.float32), ((0, 0), (0, pad_h)))
    b1_p = jnp.pad(b1.astype(jnp.float32).reshape(1, -1), ((0, 0), (0, pad_h)))
    w2_p = jnp.pad(w2.astype(jnp.float32), ((0, pad_h), (0, 0)))
    b2_p = b2.astype(jnp.float32).reshape(1, -1)
    return w1_p, b1_p, w2_p, b2_p


def _reference(x, w1, b1, w2, b2):
    return jnp.maximum(x.astype(jnp.float32) @ w1 + b1, 0.0) @ w2 + b2


# TODO(synk): Linear_QNet.save() (torch.save to ./model) is host-side file I/O,
# not part of the forward pass, and is intentionally not translated.

if __name__ == "__main__":
    # Small shapes consistent with the module (snake-game Q-net style).
    input_size, hidden_size, output_size = 16, 32, 4

    key = jax.random.PRNGKey(0)
    k_x, k_x2, k_p = jax.random.split(key, 3)
    w1, b1, w2, b2 = init_params(k_p, input_size, hidden_size, output_size)
    # One-time parameter prep (padding amortized away from the forward path).
    w1_p, b1_p, w2_p, b2_p = prepare_params(w1, b1, w2, b2)
    jax.block_until_ready((w1_p, b1_p, w2_p, b2_p))

    # Case 1: tiny batch (single-tile grid, exactly-sized row block).
    x_small = jax.random.normal(k_x, (8, input_size), jnp.float32)
    out_small = linear_qnet_forward(x_small, w1_p, b1_p, w2_p, b2_p)
    jax.block_until_ready(out_small)
    assert out_small.shape == (8, output_size)
    assert jnp.allclose(out_small, _reference(x_small, w1, b1, w2, b2),
                        atol=1e-5, rtol=1e-5)

    # Case 2: larger, non-aligned batch -> multi-tile grid + batch-row padding.
    x_big = jax.random.normal(k_x2, (600, input_size), jnp.float32)
    out_big = linear_qnet_forward(x_big, w1_p, b1_p, w2_p, b2_p)
    jax.block_until_ready(out_big)
    assert out_big.shape == (600, output_size)
    assert jnp.allclose(out_big, _reference(x_big, w1, b1, w2, b2),
                        atol=1e-5, rtol=1e-5)

    print("KERNEL_OK")
</pallas_src>

<mosaic_0001>
module attributes {stable_mosaic.version = 11 : i64} {
  func.func @_qnet_kernel(%arg0: i32, %arg1: memref<8x16xf32, #tpu.memory_space<vmem>>, %arg2: memref<16x128xf32, #tpu.memory_space<vmem>>, %arg3: memref<1x128xf32, #tpu.memory_space<vmem>>, %arg4: memref<128x4xf32, #tpu.memory_space<vmem>>, %arg5: memref<1x4xf32, #tpu.memory_space<vmem>>, %arg6: memref<8x4xf32, #tpu.memory_space<vmem>>) attributes {dimension_semantics = [#tpu.dimension_semantics<parallel>], iteration_bounds = array<i64: 1>, scalar_prefetch = 0 : i64, scratch_operands = 0 : i64, tpu.core_type = #tpu.core_type<tc>, window_params = [{transform_indices = @transform_0, window_bounds = array<i64: 8, 16>}, {pipeline_mode = #tpu.pipeline_mode<synchronous>, transform_indices = @transform_1, window_bounds = array<i64: 16, 128>}, {pipeline_mode = #tpu.pipeline_mode<synchronous>, transform_indices = @transform_2, window_bounds = array<i64: 1, 128>}, {pipeline_mode = #tpu.pipeline_mode<synchronous>, transform_indices = @transform_3, window_bounds = array<i64: 128, 4>}, {pipeline_mode = #tpu.pipeline_mode<synchronous>, transform_indices = @transform_4, window_bounds = array<i64: 1, 4>}, {transform_indices = @transform_5, window_bounds = array<i64: 8, 4>}]} {
    %c0 = arith.constant 0 : index
    %c0_0 = arith.constant 0 : index
    %0 = vector.load %arg1[%c0, %c0_0] : memref<8x16xf32, #tpu.memory_space<vmem>>, vector<8x16xf32>
    %c0_1 = arith.constant 0 : index
    %c0_2 = arith.constant 0 : index
    %1 = vector.load %arg2[%c0_1, %c0_2] : memref<16x128xf32, #tpu.memory_space<vmem>>, vector<16x128xf32>
    %cst = arith.constant dense<0.000000e+00> : vector<8x128xf32>
    %2 = tpu.matmul %0, %1, %cst {dimension_numbers = #tpu.dot_dimension_numbers<[1], [0], [0], [1], [0, 0, 1, 1], [], []>} : vector<8x16xf32>, vector<16x128xf32>, vector<8x128xf32> -> vector<8x128xf32>
    %c0_3 = arith.constant 0 : index
    %c0_4 = arith.constant 0 : index
    %3 = vector.load %arg3[%c0_3, %c0_4] : memref<1x128xf32, #tpu.memory_space<vmem>>, vector<1x128xf32>
    %4 = vector.broadcast %3 : vector<1x128xf32> to vector<8x128xf32>
    %5 = arith.addf %2, %4 : vector<8x128xf32>
    %cst_5 = arith.constant 0.000000e+00 : f32
    %6 = vector.broadcast %cst_5 : f32 to vector<8x128xf32>
    %7 = arith.maximumf %5, %6 : vector<8x128xf32>
    %c0_6 = arith.constant 0 : index
    %c0_7 = arith.constant 0 : index
    %8 = vector.load %arg4[%c0_6, %c0_7] : memref<128x4xf32, #tpu.memory_space<vmem>>, vector<128x4xf32>
    %cst_8 = arith.constant dense<0.000000e+00> : vector<8x4xf32>
    %9 = tpu.matmul %7, %8, %cst_8 {dimension_numbers = #tpu.dot_dimension_numbers<[1], [0], [0], [1], [0, 0, 1, 1], [], []>} : vector<8x128xf32>, vector<128x4xf32>, vector<8x4xf32> -> vector<8x4xf32>
    %c0_9 = arith.constant 0 : index
    %c0_10 = arith.constant 0 : index
    %10 = vector.load %arg5[%c0_9, %c0_10] : memref<1x4xf32, #tpu.memory_space<vmem>>, vector<1x4xf32>
    %11 = vector.broadcast %10 : vector<1x4xf32> to vector<8x4xf32>
    %12 = arith.addf %9, %11 : vector<8x4xf32>
    %c0_11 = arith.constant 0 : index
    %c0_12 = arith.constant 0 : index
    %13 = vector.load %arg6[%c0_11, %c0_12] : memref<8x4xf32, #tpu.memory_space<vmem>>, vector<8x4xf32>
    tpu.vector_store %arg6[%c0_11, %c0_12], %12 {strides = array<i32>} : memref<8x4xf32, #tpu.memory_space<vmem>>, vector<8x4xf32>,
    return
  }
  func.func @transform_0(%arg0: i32) -> (i32, i32) {
    %c0_i32 = arith.constant 0 : i32
    %c0_i32_0 = arith.constant 0 : i32
    return %arg0, %c0_i32 : i32, i32
  }
  func.func @transform_1(%arg0: i32) -> (i32, i32) {
    %c0_i32 = arith.constant 0 : i32
    %c0_i32_0 = arith.constant 0 : i32
    %c0_i32_1 = arith.constant 0 : i32
    return %c0_i32, %c0_i32_0 : i32, i32
  }
  func.func @transform_2(%arg0: i32) -> (i32, i32) {
    %c0_i32 = arith.constant 0 : i32
    %c0_i32_0 = arith.constant 0 : i32
    %c0_i32_1 = arith.constant 0 : i32
    return %c0_i32, %c0_i32_0 : i32, i32
  }
  func.func @transform_3(%arg0: i32) -> (i32, i32) {
    %c0_i32 = arith.constant 0 : i32
    %c0_i32_0 = arith.constant 0 : i32
    %c0_i32_1 = arith.constant 0 : i32
    return %c0_i32, %c0_i32_0 : i32, i32
  }
  func.func @transform_4(%arg0: i32) -> (i32, i32) {
    %c0_i32 = arith.constant 0 : i32
    %c0_i32_0 = arith.constant 0 : i32
    %c0_i32_1 = arith.constant 0 : i32
    return %c0_i32, %c0_i32_0 : i32, i32
  }
  func.func @transform_5(%arg0: i32) -> (i32, i32) {
    %c0_i32 = arith.constant 0 : i32
    %c0_i32_0 = arith.constant 0 : i32
    return %arg0, %c0_i32 : i32, i32
  }
}

</mosaic_0001>

<bundles_post_ra>
// kernel: linear_qnet_forward.1
= control target key start
LH: loop header
LB: loop body
LE: loop exit
PB: predicated region body
PF: predicated region fallthrough
CT: control target
= control target key end

     0   :  { %v271_v0 = vmov 0.0   ;;  %vm272_vm0 = vmmov 0   ;;  %vm30_vm1 = vcmask 130048   ;;  %vm198_vm2 = vcmask 31744   ;;  %s371_s1 = inlined_call_operand.vmem [shape: f32[16,128], index: 1, kind: input, shape index: {}]   ;;  %s372_s0 = inlined_call_operand.vmem [shape: f32[8,16], index: 0, kind: input, shape index: {}]   ;;  %s373_s3 = inlined_call_operand.vmem [shape: f32[128,4], index: 3, kind: input, shape index: {}]   ;;  %s374_s2 = inlined_call_operand.vmem [shape: f32[1,128], index: 2, kind: input, shape index: {}]   ;;  %s375_s4 = inlined_call_operand.vmem [shape: f32[1,4], index: 4, kind: input, shape index: {}]   ;;  %s376_s5 = inlined_call_operand.vmem [shape: f32[8,4], index: 5, kind: output, shape index: {}]  }
   0x1   :  { %227 = vmatprep.subr.mxu0 %v271_v0  ;;  %v22_v1 = vld [vmem:[%s371_s1 + $0x8] sm:$0xff]  ;;  %v21_v2 = vld [vmem:[%s371_s1] sm:$0xff]  ;;  %231 = vmatprep.mubr.msk.f32.mxu0 %vm272_vm0, %v271_v0  ;;  %v120_v4 = vld [vmem:[%s373_s3 + $0x78] sm:$0xff] }
   0x2   :  { %228 = vmatpush3.msra.mxu0 %v22_v1  ;;  %v20_v3 = vld [vmem:[%s372_s0] sm:$0xff]  ;;  %234 = vmatprep.subr.mxu1 %v271_v0  ;;  %v119_v5 = vld [vmem:[%s373_s3 + $0x70] sm:$0xff]  ;;  %v118_v6 = vld [vmem:[%s373_s3 + $0x68] sm:$0xff] }
   0x3   :  { %229 = vmatprep.subr.mxu0 %v271_v0  ;;  %235 = vmatpush3.msra.mxu1 %v120_v4  ;;  %v117_v7 = vld [vmem:[%s373_s3 + $0x60] sm:$0xff]  ;;  %v116_v8 = vld [vmem:[%s373_s3 + $0x58] sm:$0xff]  ;;  %v115_v9 = vld [vmem:[%s373_s3 + $0x50] sm:$0xff] }
   0x4   :  { %230 = vmatpush3.msra.mxu0 %v21_v2  ;;  %236 = vmatprep.subr.mxu1 %v271_v0  ;;  %v114_v10 = vld [vmem:[%s373_s3 + $0x48] sm:$0xff]  ;;  %v113_v11 = vld [vmem:[%s373_s3 + $0x40] sm:$0xff]  ;;  %v112_v12 = vld [vmem:[%s373_s3 + $0x38] sm:$0xff] }
   0x5   :  { %232 = vmatmul.mubr.msk.f32.vlgmr.msra.gmra.mxu0 %vm30_vm1, %v20_v3  ;;  %237 = vmatpush3.msra.mxu1 %v119_v5  ;;  %v111_v13 = vld [vmem:[%s373_s3 + $0x30] sm:$0xff]  ;;  %v110_v14 = vld [vmem:[%s373_s3 + $0x28] sm:$0xff]  ;;  %v109_v15 = vld [vmem:[%s373_s3 + $0x20] sm:$0xff] }
   0x6   :  { %238 = vmatprep.subr.mxu1 %v271_v0  ;;  %266 = vmatprep.mubr.msk.f32.mxu1 %vm272_vm0, %v271_v0  ;;  %v108_v16 = vld [vmem:[%s373_s3 + $0x18] sm:$0xff]  ;;  %v107_v17 = vld [vmem:[%s373_s3 + $0x10] sm:$0xff]  ;;  %v106_v18 = vld [vmem:[%s373_s3 + $0x8] sm:$0xff] }
   0x7   :  { %239 = vmatpush3.msra.mxu1 %v118_v6  ;;  %v105_v19 = vld [vmem:[%s373_s3] sm:$0xff] }
   0x8   :  { %240 = vmatprep.subr.mxu1 %v271_v0  ;;  %v204_v20 = vld [vmem:[%s374_s2] ss:$0 sm:$0xff] }
   0x9   :  { %241 = vmatpush3.msra.mxu1 %v117_v7  ;;  %v206_v25 = vld [vmem:[%s375_s4] ss:$0 sm:$0xff] }
   0xa   :  { %242 = vmatprep.subr.mxu1 %v271_v0 }
   0xb   :  { %243 = vmatpush3.msra.mxu1 %v116_v8 }
   0xc   :  { %244 = vmatprep.subr.mxu1 %v271_v0 }
   0xd   :  { %245 = vmatpush3.msra.mxu1 %v115_v9 }
   0xe   :  { %246 = vmatprep.subr.mxu1 %v271_v0 }
   0xf   :  { %247 = vmatpush3.msra.mxu1 %v114_v10 }
  0x10   :  { %248 = vmatprep.subr.mxu1 %v271_v0 }
  0x11   :  { %249 = vmatpush3.msra.mxu1 %v113_v11 }
  0x12   :  { %250 = vmatprep.subr.mxu1 %v271_v0 }
  0x13   :  { %251 = vmatpush3.msra.mxu1 %v112_v12 }
  0x14   :  { %252 = vmatprep.subr.mxu1 %v271_v0 }
  0x15   :  { %253 = vmatpush3.msra.mxu1 %v111_v13 }
  0x16   :  { %254 = vmatprep.subr.mxu1 %v271_v0 }
  0x17   :  { %255 = vmatpush3.msra.mxu1 %v110_v14 }
  0x18   :  { %256 = vmatprep.subr.mxu1 %v271_v0 }
  0x19   :  { %257 = vmatpush3.msra.mxu1 %v109_v15 }
  0x1a   :  { %258 = vmatprep.subr.mxu1 %v271_v0 }
  0x1b   :  { %259 = vmatpush3.msra.mxu1 %v108_v16 }
  0x1c   :  { %260 = vmatprep.subr.mxu1 %v271_v0 }
  0x1d   :  { %261 = vmatpush3.msra.mxu1 %v107_v17 }
  0x1e   :  { %262 = vmatprep.subr.mxu1 %v271_v0 }
  0x1f   :  { %263 = vmatpush3.msra.mxu1 %v106_v18 }
  0x20   :  { %264 = vmatprep.subr.mxu1 %v271_v0 }
  0x21   :  { %265 = vmatpush3.msra.mxu1 %v105_v19 }
  0xc5   :  { %v100_v21 = vpop.f32.mrf.mxu0 }
  0xc6   :  { %v101_v22 = vadd.f32 %v204_v20, %v100_v21 }
  0xc7   :  { %v233_v23 = vpop.f32.mrf.mxu0 }
  0xc8   :  { %v104_v24 = vmax.f32 %v101_v22, 0.0 }
  0xca   :  { %267 = vmatmul.mubr.f32.vlgmr.msra.gmra.mxu1 %v104_v24 }
 0x18a   :  { %v194_v26 = vpop.f32.mrf.mxu1 }
 0x18b   :  { %v195_v27 = vadd.f32 %v206_v25, %v194_v26 }
 0x18c   :  { %v268_v28 = vpop.f32.mrf.mxu1 }
 0x18d   :  { %199 = vst.msk [vmem:[%s376_s5] sm:$0xff] %vm198_vm2, %v195_v27 }

</bundles_post_ra>
